<compile_context>
chip_gen: v5e
topology: v5e:2x2
jax: 0.10.0
libtpu: 0.0.40
codegen_flags: <defaults>
</compile_context>

<pallas_src>
import math

import numpy as np
import jax
import jax.numpy as jnp
from jax import lax
from jax.experimental import pallas as pl
from jax.experimental.pallas import tpu as pltpu


def _round_up(x, m):
    return pl.cdiv(x, m) * m


# ----------------------------------------------------------------------------
# Pallas kernels
# ----------------------------------------------------------------------------

# Lane padding of the fused projection width.  128 keeps the demo small;
# bump to 256 on v6e/v7x for full-width MXU passes (padding is weights-only).
PROJ_LANE_PAD = 128

MAX_TILE = 512  # nnz tile size (lane-aligned); >=512 amortizes per-step overhead


def _proj_kernel(x_ref, w_ref, o_ref):
    o_ref[...] = jnp.dot(x_ref[...], w_ref[...],
                         preferred_element_type=jnp.float32)


def pallas_batched_matmul(x_stack, w_stack):
    """(E, m, k) @ (E, k, n) -> (E, m, n), one grid step per entity.

    Single launch for every entity's fused projection; the entity axis is
    marked "parallel" so both v7x TensorCores get work."""
    e, m, k = x_stack.shape
    _, _, n = w_stack.shape
    return pl.pallas_call(
        _proj_kernel,
        out_shape=jax.ShapeDtypeStruct((e, m, n), jnp.float32),
        grid=(e,),
        in_specs=[pl.BlockSpec((None, m, k), lambda i: (i, 0, 0)),
                  pl.BlockSpec((None, k, n), lambda i: (i, 0, 0))],
        out_specs=pl.BlockSpec((None, m, n), lambda i: (i, 0, 0)),
        compiler_params=pltpu.CompilerParams(
            dimension_semantics=("parallel",)),
    )(x_stack, w_stack)


def _combine_square_kernel(r_ref, c_ref, ad_ref, b_ref, o_ref):
    """Gather + row/col broadcast + masked diag-embed for square relations.

    r_ref : (1, T)        int32   row indices
    c_ref : (1, T)        int32   col indices
    ad_ref: (2*od, n_a)   f32     [row table (cvec folded) ; diag table (dvec folded)]^T
    b_ref : (od, n_b)     f32     col-broadcast table^T
    o_ref : (T, od)       f32     output tile (transposed in-kernel before store)
    """
    r = r_ref[...]                        # (1, T)
    c = c_ref[...]                        # (1, T)
    od2, na = ad_ref.shape
    od = od2 // 2
    nb = b_ref.shape[1]
    t = r.shape[1]

    # gather-by-index via one-hot matmuls on the MXU (vreg-dense (n, T) one-hots)
    oh_r = (lax.broadcasted_iota(jnp.int32, (na, t), 0) == r).astype(jnp.float32)
    oh_c = (lax.broadcasted_iota(jnp.int32, (nb, t), 0) == c).astype(jnp.float32)

    ad = jnp.dot(ad_ref[...], oh_r, preferred_element_type=jnp.float32)  # (2*od, T)
    bc = jnp.dot(b_ref[...], oh_c, preferred_element_type=jnp.float32)   # (od, T)

    diag = (r == c).astype(jnp.float32)                                  # (1, T)
    y = ad[:od, :] + bc + diag * ad[od:, :]                              # (od, T)
    o_ref[...] = y.T                                                     # (T, od)


def _combine_rect_kernel(r_ref, c_ref, a_ref, b_ref, o_ref):
    """Rectangular relations (a != b): no diag table, no r==c mask."""
    r = r_ref[...]
    c = c_ref[...]
    na = a_ref.shape[1]
    nb = b_ref.shape[1]
    t = r.shape[1]

    oh_r = (lax.broadcasted_iota(jnp.int32, (na, t), 0) == r).astype(jnp.float32)
    oh_c = (lax.broadcasted_iota(jnp.int32, (nb, t), 0) == c).astype(jnp.float32)

    y = (jnp.dot(a_ref[...], oh_r, preferred_element_type=jnp.float32)
         + jnp.dot(b_ref[...], oh_c, preferred_element_type=jnp.float32))  # (od, T)
    o_ref[...] = y.T                                                       # (T, od)


def pallas_broadcast_combine(row_idx, col_idx, a_T, b_T, d_T=None):
    """Returns (nnz, out_dim) values for the COO target structure.

    a_T: (od, n_a) row table^T (constant/pooled vector already folded in)
    b_T: (od, n_b) col table^T
    d_T: (od, n_a) diag table^T (pooled-diag vector folded in), square rels only
    """
    od, na = a_T.shape
    nb = b_T.shape[1]
    nnz = int(row_idx.shape[0])
    if nnz == 0:
        return jnp.zeros((0, od), jnp.float32)

    tile = min(MAX_TILE, _round_up(nnz, 128))
    nnz_pad = _round_up(nnz, tile)
    pad = nnz_pad - nnz
    # padded positions (-1 / -2) match no table row and never satisfy r == c
    r_p = jnp.pad(row_idx.astype(jnp.int32), (0, pad), constant_values=-1)[None, :]
    c_p = jnp.pad(col_idx.astype(jnp.int32), (0, pad), constant_values=-2)[None, :]

    if d_T is not None:
        kernel = _combine_square_kernel
        tabs = (jnp.concatenate([a_T, d_T], axis=0), b_T)    # (2*od, n_a), (od, n_b)
        tab_specs = [pl.BlockSpec((2 * od, na), lambda i: (0, 0)),
                     pl.BlockSpec((od, nb), lambda i: (0, 0))]
    else:
        kernel = _combine_rect_kernel
        tabs = (a_T, b_T)
        tab_specs = [pl.BlockSpec((od, na), lambda i: (0, 0)),
                     pl.BlockSpec((od, nb), lambda i: (0, 0))]

    out = pl.pallas_call(
        kernel,
        out_shape=jax.ShapeDtypeStruct((nnz_pad, od), jnp.float32),
        grid=(nnz_pad // tile,),
        in_specs=[pl.BlockSpec((1, tile), lambda i: (0, i)),   # row indices tile
                  pl.BlockSpec((1, tile), lambda i: (0, i)),   # col indices tile
                  *tab_specs],
        out_specs=pl.BlockSpec((tile, od), lambda i: (i, 0)),
        compiler_params=pltpu.CompilerParams(
            dimension_semantics=("parallel",)),
    )(r_p, c_p, *tabs)
    return out if pad == 0 else out[:nnz]


# ----------------------------------------------------------------------------
# Layer (parameter setup + glue in plain JAX, compute in Pallas)
# ----------------------------------------------------------------------------

class SparseMatrixEntityBroadcastingLayerPallas:
    """JAX/Pallas port of SparseMatrixEntityBroadcastingLayer.forward.

    entities:  dict entity_id -> n_instances (the input "encodings" schema is
               one set relation per entity, as in the PyTorch __init__).
    relations: dict rel_id -> (entity_a, entity_b)  (the output schema).
    """

    def __init__(self, entities, relations, input_dim, output_dim, key,
                 pool_op='mean'):
        assert pool_op == 'mean'
        assert output_dim % 8 == 0, \
            "out_dim must be a multiple of 8 (f32 sublane tile) for the Pallas path"
        self.entities = dict(entities)
        self.relations = dict(relations)
        self.in_dim = input_dim
        self.out_dim = output_dim
        stdv = 1.0 / math.sqrt(input_dim)

        # Original per-(entity, relation) weight tensors (n_params, in, out),
        # matching nn.Parameter(Tensor(n_params, in_dim, out_dim).uniform_).
        self.weights = {}
        self.bias = {}
        for rel_id, (a, b) in self.relations.items():
            for ent in self.entities:
                n_params = len(self._ops(ent, a, b))
                key, sub = jax.random.split(key)
                self.weights[(ent, rel_id)] = jax.random.uniform(
                    sub, (n_params, input_dim, output_dim),
                    minval=-stdv, maxval=stdv, dtype=jnp.float32)
            n_bias_rows = 2 if a == b else 1     # diag bias for square relations
            self.bias[rel_id] = jnp.zeros((n_bias_rows, output_dim), jnp.float32)

        # Fused per-entity weight: every (relation, basis-op) slice stacked
        # along the output dim; all entities stacked into one (n_ent, K, N_pad)
        # tensor so the whole projection is one batched pallas_call.
        self._ent_list = list(self.entities.keys())
        self._layouts = {}
        widths = []
        for ent in self._ent_list:
            off, layout = 0, []
            for rel_id, (a, b) in self.relations.items():
                for k_i, op in enumerate(self._ops(ent, a, b)):
                    layout.append((rel_id, op, off))
                    off += output_dim
            self._layouts[ent] = layout
            widths.append(off)
        n_pad = _round_up(max(widths), PROJ_LANE_PAD)
        w_stack = []
        for ent in self._ent_list:
            cols = []
            for rel_id, (a, b) in self.relations.items():
                w = self.weights[(ent, rel_id)]
                for k_i, op in enumerate(self._ops(ent, a, b)):
                    cols.append(w[k_i])                      # (in_dim, out_dim)
            w_flat = jnp.concatenate(cols, axis=1)
            w_flat = jnp.pad(w_flat, ((0, 0), (0, n_pad - w_flat.shape[1])))
            w_stack.append(w_flat)
        self._w_stack = jnp.stack(w_stack, axis=0)           # (n_ent, K, N_pad)
        # +1 row per entity for the mean(X) "pooled" row, padded to sublane mult.
        self._m_pad = max(int(_round_up(self.entities[e] + 1, 8))
                          for e in self._ent_list)

    @staticmethod
    def _ops(ent, a, b):
        # TODO(synk): hard-coded basis enumeration (see module header).
        if ent == a and ent == b:
            return ('diag', 'row', 'col', 'pool_all', 'pool_diag')
        if ent == a:
            return ('row', 'pool_all')
        if ent == b:
            return ('col', 'pool_all')
        return ('pool_all',)

    def forward(self, data, data_target):
        """data:        dict entity_id -> (n_e, in_dim) encodings
           data_target: dict rel_id   -> (row_idx, col_idx) target structure"""
        od = self.out_dim

        # Phase 1: ONE batched fused projection for all entities.  A mean(X)
        # row is appended to each entity's encodings so pooled slices fall
        # directly out of the matmul result.
        x_rows = []
        for ent in self._ent_list:
            x = data[ent].astype(jnp.float32)
            xm = jnp.mean(x, axis=0, keepdims=True)
            x_aug = jnp.concatenate([x, xm], axis=0)
            x_aug = jnp.pad(x_aug, ((0, self._m_pad - x_aug.shape[0]), (0, 0)))
            x_rows.append(x_aug)
        x_stack = jnp.stack(x_rows, axis=0)                  # (n_ent, M_pad, K)
        proj = pallas_batched_matmul(x_stack, self._w_stack) # (n_ent, M_pad, N_pad)

        out = {}
        for rel_id, (a, b) in self.relations.items():
            n_a, n_b = self.entities[a], self.entities[b]
            square = (a == b)
            a_tab = jnp.zeros((n_a, od), jnp.float32)    # row-broadcast table
            b_tab = jnp.zeros((n_b, od), jnp.float32)    # col-broadcast table
            d_tab = jnp.zeros((n_a, od), jnp.float32) if square else None
            cvec = jnp.zeros((1, od), jnp.float32)       # pooled -> broadcast all
            dvec = jnp.zeros((1, od), jnp.float32) if square else None

            # Phase 2: slice the fused projection into per-op tables (tiny XLA).
            for e_idx, ent in enumerate(self._ent_list):
                n_e = self.entities[ent]
                y = proj[e_idx]
                for (r_id, op, off) in self._layouts[ent]:
                    if r_id != rel_id:
                        continue
                    if op == 'diag':
                        d_tab = d_tab + y[:n_e, off:off + od]
                    elif op == 'row':
                        a_tab = a_tab + y[:n_e, off:off + od]
                    elif op == 'col':
                        b_tab = b_tab + y[:n_e, off:off + od]
                    elif op == 'pool_all':
                        cvec = cvec + y[n_e:n_e + 1, off:off + od]
                    elif op == 'pool_diag':
                        dvec = dvec + y[n_e:n_e + 1, off:off + od]

            # add_bias(): bias[0] everywhere, bias[1] on the diagonal (square rels).
            # Fold the constant vector into the row table (every nnz hits exactly
            # one row) and the diag vector into the diag table -> no cd input.
            cvec = cvec + self.bias[rel_id][0:1]
            a_tab = a_tab + cvec
            if square:
                dvec = dvec + self.bias[rel_id][1:2]
                d_tab = d_tab + dvec

            # Phase 3: run the combine kernel with transposed tables.
            row_idx, col_idx = data_target[rel_id]
            out[rel_id] = pallas_broadcast_combine(
                row_idx, col_idx, a_tab.T, b_tab.T,
                d_tab.T if square else None)
        return out


# ----------------------------------------------------------------------------
# Pure-JAX reference (original per-op semantics, for correctness check only)
# ----------------------------------------------------------------------------

def reference_forward(layer, data, data_target):
    out = {}
    for rel_id, (a, b) in layer.relations.items():
        n_a, n_b = layer.entities[a], layer.entities[b]
        a_tab = jnp.zeros((n_a, layer.out_dim), jnp.float32)
        b_tab = jnp.zeros((n_b, layer.out_dim), jnp.float32)
        d_tab = jnp.zeros((n_a, layer.out_dim), jnp.float32)
        cvec = jnp.zeros((1, layer.out_dim), jnp.float32)
        dvec = jnp.zeros((1, layer.out_dim), jnp.float32)
        for ent, x in data.items():
            w = layer.weights[(ent, rel_id)]
            xm = jnp.mean(x, axis=0, keepdims=True)
            if ent == a and ent == b:
                d_tab = d_tab + x @ w[0]
                a_tab = a_tab + x @ w[1]
                b_tab = b_tab + x @ w[2]
                cvec = cvec + xm @ w[3]
                dvec = dvec + xm @ w[4]
            elif ent == a:
                a_tab = a_tab + x @ w[0]
                cvec = cvec + xm @ w[1]
            elif ent == b:
                b_tab = b_tab + x @ w[0]
                cvec = cvec + xm @ w[1]
            else:
                cvec = cvec + xm @ w[0]
        cvec = cvec + layer.bias[rel_id][0:1]
        if a == b:
            dvec = dvec + layer.bias[rel_id][1:2]
        row, col = data_target[rel_id]
        y = a_tab[row] + b_tab[col]
        diag = (row == col)[:, None].astype(jnp.float32)
        y = y + diag * (d_tab[row] + dvec)
        y = y + cvec
        out[rel_id] = y
    return out


# ----------------------------------------------------------------------------
# Demo
# ----------------------------------------------------------------------------

if __name__ == "__main__":
    key = jax.random.PRNGKey(0)
    k_layer, k_x0, k_x1, k_r0r, k_r0c, k_r1 = jax.random.split(key, 6)

    entities = {"E0": 16, "E1": 24}
    relations = {"R0": ("E0", "E1"),   # rectangular relation (no diag path)
                 "R1": ("E0", "E0")}   # square relation (diag-embed + diag bias)
    in_dim, out_dim = 32, 16

    layer = SparseMatrixEntityBroadcastingLayerPallas(
        entities, relations, in_dim, out_dim, k_layer, pool_op='mean')

    data = {
        "E0": jax.random.normal(k_x0, (entities["E0"], in_dim), jnp.float32),
        "E1": jax.random.normal(k_x1, (entities["E1"], in_dim), jnp.float32),
    }

    # Target sparse structures (COO indices) for each output relation.
    nnz0 = 40
    r0_rows = jax.random.randint(k_r0r, (nnz0,), 0, entities["E0"], jnp.int32)
    r0_cols = jax.random.randint(k_r0c, (nnz0,), 0, entities["E1"], jnp.int32)
    r1_rows = jax.random.randint(jax.random.fold_in(k_r1, 0), (30,), 0,
                                 entities["E0"], jnp.int32)
    r1_cols = jax.random.randint(jax.random.fold_in(k_r1, 1), (30,), 0,
                                 entities["E0"], jnp.int32)
    diag_ids = jnp.arange(8, dtype=jnp.int32)   # ensure diag path is exercised
    r1_rows = jnp.concatenate([r1_rows, diag_ids])
    r1_cols = jnp.concatenate([r1_cols, diag_ids])
    data_target = {"R0": (r0_rows, r0_cols), "R1": (r1_rows, r1_cols)}

    out = layer.forward(data, data_target)
    out = jax.tree_util.tree_map(jax.block_until_ready, out)

    ref = reference_forward(layer, data, data_target)
    for rel_id in relations:
        np.testing.assert_allclose(np.asarray(out[rel_id]),
                                   np.asarray(ref[rel_id]),
                                   rtol=1e-3, atol=1e-3)

    print("KERNEL_OK")
</pallas_src>

<mosaic_0001>
module attributes {stable_mosaic.version = 11 : i64} {
  func.func @_proj_kernel(%arg0: i32, %arg1: memref<1x32x32xf32, #tpu.memory_space<vmem>>, %arg2: memref<1x32x128xf32, #tpu.memory_space<vmem>>, %arg3: memref<1x32x128xf32, #tpu.memory_space<vmem>>) attributes {dimension_semantics = [#tpu.dimension_semantics<parallel>], iteration_bounds = array<i64: 2>, scalar_prefetch = 0 : i64, scratch_operands = 0 : i64, tpu.core_type = #tpu.core_type<tc>, window_params = [{transform_indices = @transform_0, window_bounds = array<i64: 1, 32, 32>}, {transform_indices = @transform_1, window_bounds = array<i64: 1, 32, 128>}, {transform_indices = @transform_2, window_bounds = array<i64: 1, 32, 128>}]} {
    %c0 = arith.constant 0 : index
    %c0_0 = arith.constant 0 : index
    %c0_1 = arith.constant 0 : index
    %0 = vector.load %arg1[%c0, %c0_0, %c0_1] : memref<1x32x32xf32, #tpu.memory_space<vmem>>, vector<1x32x32xf32>
    %1 = vector.shape_cast %0 : vector<1x32x32xf32> to vector<32x32xf32>
    %c0_2 = arith.constant 0 : index
    %c0_3 = arith.constant 0 : index
    %c0_4 = arith.constant 0 : index
    %2 = vector.load %arg2[%c0_2, %c0_3, %c0_4] : memref<1x32x128xf32, #tpu.memory_space<vmem>>, vector<1x32x128xf32>
    %3 = vector.shape_cast %2 : vector<1x32x128xf32> to vector<32x128xf32>
    %cst = arith.constant dense<0.000000e+00> : vector<32x128xf32>
    %4 = tpu.matmul %1, %3, %cst {dimension_numbers = #tpu.dot_dimension_numbers<[1], [0], [0], [1], [0, 0, 1, 1], [], []>} : vector<32x32xf32>, vector<32x128xf32>, vector<32x128xf32> -> vector<32x128xf32>
    %c0_5 = arith.constant 0 : index
    %c0_6 = arith.constant 0 : index
    %c0_7 = arith.constant 0 : index
    %5 = vector.load %arg3[%c0_5, %c0_6, %c0_7] : memref<1x32x128xf32, #tpu.memory_space<vmem>>, vector<1x32x128xf32>
    %6 = vector.shape_cast %5 : vector<1x32x128xf32> to vector<32x128xf32>
    %7 = vector.shape_cast %4 : vector<32x128xf32> to vector<1x32x128xf32>
    tpu.vector_store %arg3[%c0_5, %c0_6, %c0_7], %7 {strides = array<i32>} : memref<1x32x128xf32, #tpu.memory_space<vmem>>, vector<1x32x128xf32>,
    return
  }
  func.func @transform_0(%arg0: i32) -> (i32, i32, i32) {
    %c0_i32 = arith.constant 0 : i32
    %c0_i32_0 = arith.constant 0 : i32
    %c0_i32_1 = arith.constant 0 : i32
    return %arg0, %c0_i32, %c0_i32_0 : i32, i32, i32
  }
  func.func @transform_1(%arg0: i32) -> (i32, i32, i32) {
    %c0_i32 = arith.constant 0 : i32
    %c0_i32_0 = arith.constant 0 : i32
    %c0_i32_1 = arith.constant 0 : i32
    return %arg0, %c0_i32, %c0_i32_0 : i32, i32, i32
  }
  func.func @transform_2(%arg0: i32) -> (i32, i32, i32) {
    %c0_i32 = arith.constant 0 : i32
    %c0_i32_0 = arith.constant 0 : i32
    %c0_i32_1 = arith.constant 0 : i32
    return %arg0, %c0_i32, %c0_i32_0 : i32, i32, i32
  }
}

</mosaic_0001>

<bundles_post_ra>
// kernel: tpu_custom_call.1
= control target key start
LH: loop header
LB: loop body
LE: loop exit
PB: predicated region body
PF: predicated region fallthrough
CT: control target
= control target key end

     0   :  { %7 = vsyncpa [#allocation3], 0  ;;  %s788_s0 = inlined_call_operand.hbm [shape: f32[2,32,32], index: 0, kind: input, shape index: {}]   ;;  %s789_s1 = inlined_call_operand.hbm [shape: f32[2,32,128], index: 1, kind: input, shape index: {}]   ;;  %s790_s2 = inlined_call_operand.hbm [shape: f32[2,32,128], index: 2, kind: output, shape index: {}]  }
   0x1   :  { %9 = vsyncpa [#allocation3 + $0x1], 0 }
   0x2   :  { %10 = vsyncpa [#allocation6], 0 }
   0x3   :  { %12 = vsyncpa [#allocation6 + $0x1], 0 }
   0x4   :  { %13 = vsyncpa [#allocation4], 0 }
   0x5   :  { %15 = vsyncpa [#allocation4 + $0x1], 0  ;;  %s615_s9 = smov 0   ;;  %s617_s10 = smov 0  }
   0x6   :  { %s619_s11 = smov 0   ;;  %s621_s12 = smov 0  }
   0x7 LB: > { %s636_s13 = sadd.s32 4294967295, %s594_s12   ;;  %s372_s14 = sadd.s32 4294967294, %s594_s12   ;;  %s594_s12 = sphi %s621_s12, %s801_s12   ;;  %s590_s11 = sphi %s619_s11, %s800_s11   ;;  %s586_s10 = sphi %s617_s10, %s799_s10   ;;  %s582_s9 = sphi %s615_s9, %s798_s9  }
   0x8   : > { %s640_s15 = sadd.s32 1, %s594_s12   ;;  %s28_s16 = sadd.s32 1, %s590_s11 }
   0x9   : > { %s25_s17 = ssub.s32 %s594_s12, %s640_s15  ;;  %p35_p0 = scmp.ne.s32.totalorder %s590_s11, %s586_s10 }
   0xa   : > { %p26_p1 = scmp.eq.s32.totalorder %s25_s17, 0  ;;  %p36_p2 = scmp.eq.s32.totalorder %s594_s12, 0 }
   0xb   : > { %p41_p3 = scmp.ne.s32.totalorder %s586_s10, %s582_s9  ;;  %p42_p4 = scmp.eq.s32.totalorder %s636_s13, 0 }
   0xc   : > { %s652_s18 = scalar_select %p26_p1, %s590_s11, %s28_s16  }
   0xd   : > { %p654_p5 = por %p36_p2, %p35_p0  ;;  %p658_p6 = por %p42_p4, %p41_p3 }
   0xe   : > { %p91_p7 = scmp.eq.s32.totalorder %s636_s13, 1  ;;  %p97_p8 = scmp.eq.s32.totalorder %s372_s14, 1 }
   0xf   : > { %p426_p10 = scmp.lt.s32.totalorder %s594_s12, 2  ;;  %s674_s23 = sand.u32 1, %s590_s11  }
  0x10   : > { %p665_p11 = por %p91_p7, %p35_p0  ;;  %p669_p12 = por %p97_p8, %p41_p3 }
  0x11   : > { %s394_s24 = sshll.u32 %s594_s12, 5  ;;  %s375_s25 = sshll.u32 %s674_s23, 5 }
  0x12   : > { %s126_s28 = scalar_lea.hbm %s788_s0, %s394_s24  ;;  %s121_s30 = scalar_lea.vmem [#allocation2], %s375_s25 }
  0x13   : > { %s127_s29 = sshll.u32 %s126_s28, 4  ;;  %s129_s3 = sshll.u32 %s121_s30, 4  ;;  %s128_s29 = int_to_ptr.hbm [resolvable:$true] %s127_s29  ;;  %s130_s3 = int_to_ptr.vmem [resolvable:$true] %s129_s3 }
  0x14   : > { %p687_p13 = pnand %p426_p10, %p654_p5  ;;  %p381_p0 = scmp.ge.s32.totalorder %s594_s12, 1 }
  0x15   : > { %p159_p1 = scmp.lt.s32.totalorder %s594_s12, 3  ;;  %s118_s5 = scalar_lea.sflag [#allocation3], %s674_s23 }
  0x16   : > { %s464_s6 = sshra.s32 %s128_s29, 4  ;;  %p468_p3 = pneg %p687_p13  ;;  %s465_s6 = int_to_ptr.hbm [resolvable:$true] %s464_s6 }
  0x17   : > { %s466_s7 = scalar_lea.hbm %s465_s6, 32  ;;  %s471_s16 = scalar_lea.hbm %s788_s0, 64 }
  0x18   : > { %p467_p2 = scmp.ne.s32.totalorder %s465_s6, %s466_s7  ;;  %p472_p5 = scmp.lt.s32.totalorder %s465_s6, %s788_s0 }
  0x19   : > { %p473_p8 = scmp.lt.s32.totalorder %s471_s16, %s466_s7 }
  0x1a   : > { %p469_p4 = pnand %p468_p3, %p467_p2 }
  0x1b   : > { %p474_p10 = por %p473_p8, %p472_p5 }
  0x1c   : > { %p470_p7 = pneg %p469_p4 }
  0x1e   : > { %p475_p9 = pnand %p474_p10, %p470_p7 }
  0x20   : > { %478 = shalt.err (!%p475_p9)
}
  0x21   : > { %s596_s26 = smov 128   ;;  %s597_s27 = smov 8  }
  0x22   : > { %418 = dma.hbm_to_vmem [thread:$0]  (!%p687_p13), %s128_s29, 512, %s130_s3, %s118_s5, %s596_s26, %s596_s26, %s597_s27  }
  0x23   : > { %p711_p2 = pnand %p381_p0, %p159_p1  ;;  %s148_s7 = scalar_lea.hbm %s789_s1, %s394_s24 }
  0x24   : > { %s149_s8 = sshll.u32 %s148_s7, 4  ;;  %s143_s14 = scalar_lea.vmem [#allocation5], %s375_s25  ;;  %s150_s8 = int_to_ptr.hbm [resolvable:$true] %s149_s8 }
  0x25   : > { %s151_s16 = sshll.u32 %s143_s14, 4  ;;  %s140_s17 = scalar_lea.sflag [#allocation6], %s674_s23  ;;  %s152_s16 = int_to_ptr.vmem [resolvable:$true] %s151_s16 }
  0x26   : > { %s494_s19 = sshra.s32 %s150_s8, 4  ;;  %s501_s30 = scalar_lea.hbm %s789_s1, 64  ;;  %s495_s19 = int_to_ptr.hbm [resolvable:$true] %s494_s19 }
  0x27   : > { %s496_s29 = scalar_lea.hbm %s495_s19, 32  ;;  %p502_p4 = scmp.lt.s32.totalorder %s495_s19, %s789_s1 }
  0x28   : > { %p497_p9 = scmp.ne.s32.totalorder %s495_s19, %s496_s29  ;;  %p503_p7 = scmp.lt.s32.totalorder %s501_s30, %s496_s29 }
  0x2a   : > { %p499_p0 = pnand %p497_p9, %p468_p3  ;;  %p504_p5 = por %p503_p7, %p502_p4 }
  0x2c   : > { %p500_p1 = pneg %p499_p0 }
  0x2e   : > { %p505_p8 = pnand %p504_p5, %p500_p1 }
  0x30   : > { %508 = shalt.err (!%p505_p8)
}
  0x31   : > { %421 = dma.hbm_to_vmem [thread:$0]  (!%p687_p13), %s150_s8, 512, %s152_s16, %s140_s17, %s596_s26, %s596_s26, %s597_s27  }
  0x32   : > { %163 = sbr.rel (%p711_p2) target bundleno = 203 (0xcb), region = 28  ;;  %s737_s23 = sand.u32 (!%p711_p2), 1, %s586_s10  }
  0x33   : > { %s740_s25 = sshll.u32 (!%p711_p2), %s737_s23, 5  ;;  %s166_s7 = scalar_lea.sflag (!%p711_p2), [#allocation3], %s737_s23 }
  0x34   : > { %s169_s14 = scalar_lea.vmem (!%p711_p2), [#allocation2], %s740_s25 }
  0x37   : > { %569 = dma.done.wait (%p658_p6), %s166_s7, 512  }
  0x38   : > { %571 = vsyncadd (%p658_p6), %s166_s7, 4294966784  ;;  %s176_s4 = scalar_lea.sflag [#allocation6], %s737_s23  ;;  %s179_s26 = scalar_lea.vmem [#allocation5], %s740_s25 }
  0x39   : > { %573 = dma.done.wait (%p658_p6), %s176_s4, 512  }
  0x3a   : > { %575 = vsyncadd (%p658_p6), %s176_s4, 4294966784  ;;  %v213_v0 = vld [vmem:[%s179_s26 + $0x18] sm:$0xff]  ;;  %v212_v1 = vld [vmem:[%s179_s26 + $0x10] sm:$0xff]  ;;  %vm214_vm0 = vcmask 261120   ;;  %s396_s20 = sshll.u32 %s636_s13, 5  ;;  %s205_s16 = scalar_lea.vmem [#allocation7], %s740_s25 }
  0x3b   : > { %398 = vmatpush.msra.mxu2 %v213_v0  ;;  %399 = vmatpush.msra.mxu3 %v213_v0  ;;  %v211_v2 = vld [vmem:[%s179_s26 + $0x8] sm:$0xff]  ;;  %v210_v3 = vld [vmem:[%s179_s26] sm:$0xff]  ;;  %v208_v4 = vld [vmem:[%s169_s14 + $0x10] sm:$0xff]  ;;  %s272_s8 = scalar_lea.hbm %s790_s2, %s396_s20  ;;  %s273_s17 = sshll.u32 %s205_s16, 4  ;;  %s274_s17 = int_to_ptr.vmem [resolvable:$true] %s273_s17 }
  0x3c   : > { %239 = vmatpush.msra.mxu0 %v213_v0  ;;  %397 = vmatpush.msra.mxu1 %v213_v0  ;;  %v209_v5 = vld [vmem:[%s169_s14 + $0x18] sm:$0xff]  ;;  %v206_v6 = vld [vmem:[%s169_s14] sm:$0xff]  ;;  %v207_v7 = vld [vmem:[%s169_s14 + $0x8] sm:$0xff]  ;;  %s275_s19 = sshll.u32 %s272_s8, 4  ;;  %s261_s29 = scalar_lea.sflag [#allocation4], %s737_s23  ;;  %s276_s19 = int_to_ptr.hbm [resolvable:$true] %s275_s19 }
  0x3d   : > { %401 = vmatpush.msra.mxu2 %v212_v1  ;;  %402 = vmatpush.msra.mxu3 %v212_v1  ;;  %s538_s13 = sshra.s32 %s276_s19, 4  ;;  %s544_s24 = scalar_lea.hbm %s790_s2, 64  ;;  %s539_s13 = int_to_ptr.hbm [resolvable:$true] %s538_s13 }
  0x3e   : > { %240 = vmatpush.msra.mxu0 %v212_v1  ;;  %400 = vmatpush.msra.mxu1 %v212_v1  ;;  %s540_s3 = scalar_lea.hbm %s539_s13, 32  ;;  %p545_p10 = scmp.lt.s32.totalorder %s539_s13, %s790_s2 }
  0x3f   : > { %404 = vmatpush.msra.mxu2 %v211_v2  ;;  %405 = vmatpush.msra.mxu3 %v211_v2  ;;  %p541_p6 = scmp.ne.s32.totalorder %s539_s13, %s540_s3  ;;  %p546_p2 = scmp.lt.s32.totalorder %s544_s24, %s540_s3 }
  0x40   : > { %241 = vmatpush.msra.mxu0 %v211_v2  ;;  %403 = vmatpush.msra.mxu1 %v211_v2 }
  0x41   : > { %407 = vmatpush.msra.mxu2 %v210_v3  ;;  %408 = vmatpush.msra.mxu3 %v210_v3  ;;  %p542_p13 = pnand %p541_p6, %p665_p11  ;;  %p547_p9 = por %p546_p2, %p545_p10 }
  0x42   : > { %387 = vmatmul.msk.f32.vlgmr.msra.gmra.mxu2 %vm214_vm0, %v208_v4  ;;  %388 = vmatmul.msk.f32.vlgmr.msra.gmra.mxu3 %vm214_vm0, %v209_v5 }
  0x43   : > { %242 = vmatpush.msra.mxu0 %v210_v3  ;;  %406 = vmatpush.msra.mxu1 %v210_v3  ;;  %p543_p3 = pneg %p542_p13 }
  0x44   : > { %385 = vmatmul.msk.f32.vlgmr.msra.gmra.mxu0 %vm214_vm0, %v206_v6  ;;  %386 = vmatmul.msk.f32.vlgmr.msra.gmra.mxu1 %vm214_vm0, %v207_v7 }
  0x45   : > { %p548_p0 = pnand %p547_p9, %p543_p3 }
  0xc1   : > { %v244_v8 = vpop.f32.mrf.mxu0  ;;  %v247_v9 = vpop.f32.mrf.mxu1 }
  0xc2   : > { %256 = vst [vmem:[%s205_s16] sm:$0xff] %v244_v8 }
  0xc3   : > { %257 = vst [vmem:[%s205_s16 + $0x8] sm:$0xff] %v247_v9 }
  0xc5   : > { %v250_v10 = vpop.f32.mrf.mxu2  ;;  %v253_v11 = vpop.f32.mrf.mxu3 }
  0xc6   : > { %258 = vst [vmem:[%s205_s16 + $0x10] sm:$0xff] %v250_v10 }
  0xc7   : > { %259 = vst [vmem:[%s205_s16 + $0x18] sm:$0xff] %v253_v11 }
  0xc8   : > { %551 = shalt.err (!%p548_p0)
}
  0xc9   : > { %s598_s23 = smov 128   ;;  %s599_s7 = smov 8  }
  0xca   : > { %413 = dma.vmem_to_hbm [thread:$0]  (%p665_p11), %s274_s17, 512, %s276_s19, %s261_s29, %s598_s23, %s598_s23, %s599_s7  }
  0xcb PF: > { %s290_s14 = sand.u32 1, %s582_s9   ;;  %p797_p1 = scmp.ge.s32.totalorder %s594_s12, 2 }
  0xcc   : > { %s291_s4 = scalar_lea.sflag [#allocation4], %s290_s14 }
  0xcd   : > { %p423_p4 = pnand %p797_p1, %p669_p12 }
  0xcf   : > { %p424_p7 = pneg %p423_p4 }
  0xd1   : > { %577 = dma.done.wait (%p424_p7), %s291_s4, 512  }
  0xd2   : > { %579 = vsyncadd (%p424_p7), %s291_s4, 4294966784  ;;  %p18_p5 = scmp.ge.s32.totalorder %s640_s15, 4   ;;  %s798_s9 = smov %s586_s10 }
  0xd3   : > { %s799_s10 = smov %s590_s11  ;;  %s800_s11 = smov %s652_s18 }
  0xd4   : > { %s801_s12 = smov %s640_s15  ;;  %20 = sbr.rel (!%p18_p5) target bundleno = 7 (0x7), region = 86 }
  0xd9   :  { %297 = vsyncpa [#allocation3], 1 }
  0xda   :  { %299 = vsyncpa [#allocation3 + $0x1], 1 }
  0xdb   :  { %300 = vsyncpa [#allocation6], 1 }
  0xdc   :  { %302 = vsyncpa [#allocation6 + $0x1], 1 }
  0xdd   :  { %303 = vsyncpa [#allocation4], 1 }
  0xde   :  { %305 = vsyncpa [#allocation4 + $0x1], 1 }

</bundles_post_ra>
